<compile_context>
chip_gen: v7x
topology: tpu7x:2x2x1
jax: 0.10.0
libtpu: 0.0.40
codegen_flags: <defaults>
</compile_context>

<pallas_src>
import jax
import jax.numpy as jnp
from jax.experimental import pallas as pl
from jax.experimental.pallas import tpu as pltpu


# Only split the copy when it is large enough for several DMA engines to help.
_DMA_SPLIT_BYTES = 8 * 1024 * 1024
_MAX_DMA_CHUNKS = 4


def _make_copy_kernel(chunk_bounds):
    """Build a kernel that DMAs x_hbm -> o_hbm directly (no VMEM staging).

    chunk_bounds: None for a single whole-array DMA, otherwise a tuple of
    static (start, size) slices along axis 0 issued as parallel DMAs.
    """
    if chunk_bounds is None:
        def copy_kernel(x_hbm, o_hbm, sem):
            cp = pltpu.make_async_copy(x_hbm, o_hbm, sem)
            cp.start()
            cp.wait()
        return copy_kernel

    def copy_kernel(x_hbm, o_hbm, sem):
        copies = []
        for idx, (start, size) in enumerate(chunk_bounds):
            cp = pltpu.make_async_copy(
                x_hbm.at[pl.ds(start, size)],
                o_hbm.at[pl.ds(start, size)],
                sem.at[idx],
            )
            cp.start()
            copies.append(cp)
        for cp in copies:
            cp.wait()
    return copy_kernel


def _pallas_identity_impl(x: jax.Array) -> jax.Array:
    """Bit-exact copy of `x` via direct HBM->HBM DMA inside a Pallas kernel."""
    itemsize = jnp.dtype(x.dtype).itemsize
    nbytes = x.size * itemsize
    lead = x.shape[0] if x.ndim >= 1 else 1

    if nbytes >= _DMA_SPLIT_BYTES and lead >= 2:
        # A few large parallel DMAs along the (static) leading axis.
        n_dma = min(_MAX_DMA_CHUNKS, lead)
        base, rem = divmod(lead, n_dma)
        bounds, start = [], 0
        for i in range(n_dma):
            size = base + (1 if i < rem else 0)
            bounds.append((start, size))
            start += size
        chunk_bounds = tuple(bounds)
        sem_shape = pltpu.SemaphoreType.DMA((n_dma,))
    else:
        chunk_bounds = None
        sem_shape = pltpu.SemaphoreType.DMA(())

    kernel = _make_copy_kernel(chunk_bounds)

    return pl.pallas_call(
        kernel,
        out_shape=jax.ShapeDtypeStruct(x.shape, x.dtype),
        in_specs=[pl.BlockSpec(memory_space=pl.ANY)],   # raw HBM ref, no auto-DMA
        out_specs=pl.BlockSpec(memory_space=pl.ANY),    # raw HBM ref, no auto-DMA
        scratch_shapes=[sem_shape],
        cost_estimate=pl.CostEstimate(
            flops=0,
            transcendentals=0,
            bytes_accessed=2 * nbytes,
        ),
    )(x)


@jax.jit
def _pallas_identity(x: jax.Array) -> jax.Array:
    if x.size == 0:
        return x
    if x.ndim == 0:
        # Give the DMA a 1-D view (bitcast under jit), then squeeze back.
        return _pallas_identity_impl(x.reshape(1))[0]
    return _pallas_identity_impl(x)


class BaseNetwork:
    """JAX/Pallas analogue of the abstract PyTorch BaseNetwork.

    No parameters (the PyTorch __init__ registers none). forward(*args)
    matches the reference no-op semantics: with no args it returns None;
    with args it passes the first one through a Pallas HBM->HBM DMA copy
    (bit-exact) purely to exercise the TPU path.
    """

    def __init__(self, **kwargs):
        # The reference module has zero parameters; nothing to initialize.
        self.params = {}

    def forward(self, *args):
        if not args:
            return None  # matches `pass` -> None in the reference forward
        return _pallas_identity(args[0])

    def __call__(self, *args):
        return self.forward(*args)


if __name__ == "__main__":
    key = jax.random.PRNGKey(0)
    # Small NCHW input consistent with a conv-style module: (N=2, C=4, H=16, W=16)
    x = jax.random.normal(key, (2, 4, 16, 16), dtype=jnp.float32)

    net = BaseNetwork()

    # Reference no-op call (matches PyTorch forward with no args -> None).
    assert net() is None

    # Single-DMA pass-through.
    y = jax.block_until_ready(net(x))
    assert y.shape == x.shape and y.dtype == x.dtype
    assert bool(jnp.all(y == x))

    # Ragged / non-tile-aligned shape: costs the same as aligned (no padding).
    z = jax.random.normal(key, (3, 5, 7), dtype=jnp.float32)
    w = jax.block_until_ready(net(z))
    assert w.shape == z.shape and bool(jnp.all(w == z))

    # Large input exercises the multi-DMA split path (16 MiB -> 4 parallel DMAs).
    big = jnp.arange(4 * 1024 * 1024, dtype=jnp.float32).reshape(4, 1024, 1024)
    big_out = jax.block_until_ready(net(big))
    assert big_out.shape == big.shape and bool(jnp.all(big_out == big))

    print("KERNEL_OK")
</pallas_src>

<mosaic_0001>
module attributes {stable_mosaic.version = 11 : i64} {
  func.func @copy_kernel(%arg0: memref<2x4x16x16xf32, #tpu.memory_space<any>>, %arg1: memref<2x4x16x16xf32, #tpu.memory_space<any>>, %arg2: memref<!tpu.dma_semaphore, #tpu.memory_space<semaphore_mem>>) attributes {dimension_semantics = [], scalar_prefetch = 0 : i64, scratch_operands = 1 : i64, tpu.core_type = #tpu.core_type<tc>} {
    tpu.enqueue_dma source(%arg0 : memref<2x4x16x16xf32, #tpu.memory_space<any>>) target(%arg1 : memref<2x4x16x16xf32, #tpu.memory_space<any>>) target_semaphore(%arg2 : memref<!tpu.dma_semaphore, #tpu.memory_space<semaphore_mem>>)
    tpu.wait_dma2 semaphore(%arg2 : memref<!tpu.dma_semaphore, #tpu.memory_space<semaphore_mem>>) src(%arg0 : memref<2x4x16x16xf32, #tpu.memory_space<any>>) dst(%arg1 : memref<2x4x16x16xf32, #tpu.memory_space<any>>)
    return
  }
}

</mosaic_0001>

<bundles_post_ra>
// kernel: _pallas_identity.1
= control target key start
LH: loop header
LB: loop body
LE: loop exit
PB: predicated region body
PF: predicated region fallthrough
CT: control target
= control target key end

     0   :  { %s36_s6 = smov [#allocation2]   ;;  %s37_s7 = smov [#allocation3]   ;;  %s55_s0 = inlined_call_operand.hbm [shape: f32[2,4,16,16], index: 0, kind: input, shape index: {}]   ;;  %s56_s1 = inlined_call_operand.hbm [shape: f32[2,4,16,16], index: 1, kind: output, shape index: {}]  }
   0x1   :  { %s38_s8 = smov 0  }
   0x2   :  { %18 = dma.general %s55_s0, 2048, %s56_s1, %s36_s6, %s37_s7, [#allocation4], %s38_s8, 0  }
   0x3   :  { %34 = dma.done.wait [#allocation2], 2048 }
   0x4   :  { %35 = vsyncadd [#allocation2], 4294965248 }
   0x5   :  { %24 = vsyncmov [#allocation2] }
   0x8   :  { %s25_s13 = vpop.sfrf %24 }
   0x9   :  { %p30_p0 = scmp.ne.s32.totalorder %s25_s13, 0 }
   0xb   :  { %29 = shalt.err (%p30_p0)  }

</bundles_post_ra>
